<compile_context>
chip_gen: v6e
topology: v6e:2x2x1
jax: 0.10.0
libtpu: 0.0.40
codegen_flags: <defaults>
</compile_context>

<pallas_src>
import functools

import jax
import jax.numpy as jnp
from jax import lax
from jax.experimental import pallas as pl
from jax.experimental.pallas import tpu as pltpu


def _round_up(n, m):
    return ((n + m - 1) // m) * m


def _choose_batch_tile(batch, tb_max):
    """Pick the batch tile (lane dim of the output block) and grid length.

    - Single full-batch block when B fits in one tile (block == full dim, so
      no (8,128) alignment constraint applies).
    - Otherwise >=2 tiles, each a multiple of 128 so the (H, tb) output block
      stays lane-dense and the (tb, I) input block stays sublane-aligned;
      tiles are balanced so both v7x TensorCores get near-equal work.
    """
    n_tiles = max(1, pl.cdiv(batch, tb_max))
    if batch >= 1024:
        n_tiles = max(n_tiles, 2)  # keep both v7x TCs busy
    if n_tiles == 1:
        return batch, 1
    tb = _round_up(pl.cdiv(batch, n_tiles), 128)
    return tb, pl.cdiv(batch, tb)


def _liquid_kernel(x_ref, w_ref, alpha_ref, o_ref, *, use_bf16_matmul):
    # Hot path: one MXU matmul (f32 accumulate), tanh on the EUP, (H,1)
    # alpha scale on the VPU, lane-dense (H, tb) store.
    w = w_ref[...]          # (H, I)
    xt = x_ref[...]         # (tb, I)
    if use_bf16_matmul:
        w = w.astype(jnp.bfloat16)
        xt = xt.astype(jnp.bfloat16)
    # Contract I with I: (H, I) x (tb, I) -> (H, tb).  Batch tile lands on the
    # lane axis, so stores are unmasked vst when tb is a multiple of 128.
    z = lax.dot_general(
        w, xt,
        dimension_numbers=(((1,), (1,)), ((), ())),
        preferred_element_type=jnp.float32,
    )
    z = jnp.tanh(z)
    o_ref[...] = (z * alpha_ref[...]).astype(o_ref.dtype)


def prepare_params(w, alpha):
    """Hoist per-call layout glue out of the hot path (done once at load time).

    w: (H, I) stays as-is (the kernel computes w @ x.T directly);
    alpha: (H,) -> (H, 1) for broadcasting over the batch (lane) axis.
    """
    H = w.shape[0]
    return w, alpha.reshape(H, 1)


@functools.partial(
    jax.jit, static_argnames=("tb_max", "use_bf16_matmul", "transpose_output")
)
def liquid_layer(x, w, alpha2d, *, tb_max=4096, use_bf16_matmul=False,
                 transpose_output=True):
    """x: (B, I), w: (H, I), alpha2d: (H, 1).

    Returns (B, H) when transpose_output=True (exact nn.Module semantics) or
    the lane-dense (H, B) result when False (avoids one extra HBM round trip;
    preferred when the consumer can accept the transposed layout).
    """
    B, I = x.shape
    H = w.shape[0]

    tb, grid_b = _choose_batch_tile(B, tb_max)

    # VMEM budget: double-buffered x/out tiles + resident w/alpha, 4x headroom,
    # clamped to 75% of this generation's physical VMEM (v7x: 64 MiB per TC).
    elt = jnp.dtype(x.dtype).itemsize
    tile_bytes = 2 * (tb * I + H * tb) * elt + (I * H + H) * elt
    try:
        vmem_cap = getattr(pltpu.get_tpu_info(), "vmem_capacity_bytes",
                           64 * 1024 * 1024)
    except Exception:  # pragma: no cover - conservative fallback
        vmem_cap = 64 * 1024 * 1024
    vmem_limit = int(min(int(0.75 * vmem_cap),
                         max(8 * 1024 * 1024, 4 * tile_bytes)))

    out_t = pl.pallas_call(
        functools.partial(_liquid_kernel, use_bf16_matmul=use_bf16_matmul),
        out_shape=jax.ShapeDtypeStruct((H, B), x.dtype),
        grid_spec=pltpu.PrefetchScalarGridSpec(
            num_scalar_prefetch=0,
            grid=(grid_b,),
            in_specs=[
                pl.BlockSpec((tb, I), lambda i: (i, 0)),  # per-tile x rows
                pl.BlockSpec((H, I), lambda i: (0, 0)),   # weight, VMEM-resident
                pl.BlockSpec((H, 1), lambda i: (0, 0)),   # alpha, VMEM-resident
            ],
            out_specs=pl.BlockSpec((H, tb), lambda i: (0, i)),  # lane-dense
        ),
        compiler_params=pltpu.CompilerParams(
            dimension_semantics=("parallel",),  # megacore-shard batch tiles
            vmem_limit_bytes=vmem_limit,
        ),
    )(x, w, alpha2d)

    if transpose_output:
        # Module-parity (B, H) layout.  For production consumers that accept
        # (H, B), call with transpose_output=False to skip this HBM round trip.
        return out_t.T
    return out_t


if __name__ == "__main__":
    key = jax.random.PRNGKey(0)
    k_w, k_a, k_x, k_x2 = jax.random.split(key, 4)

    batch, input_size, hidden_size = 8, 16, 32

    # Deterministic parameter init matching nn.Parameter shapes:
    #   w ~ randn(hidden, input), alpha ~ rand(hidden)
    w = jax.random.normal(k_w, (hidden_size, input_size), dtype=jnp.float32)
    alpha = jax.random.uniform(k_a, (hidden_size,), dtype=jnp.float32)
    w_p, alpha2d = prepare_params(w, alpha)

    def ref_fn(xv):
        return jnp.tanh(w @ xv.T).T * alpha

    # --- Case 1: small module-sized batch (single full-batch block). ---
    x = jax.random.normal(k_x, (batch, input_size), dtype=jnp.float32)
    out = jax.block_until_ready(liquid_layer(x, w_p, alpha2d))
    assert out.shape == (batch, hidden_size)
    assert jnp.allclose(out, ref_fn(x), atol=1e-5, rtol=1e-5)

    # Lane-dense (H, B) path (no wrapper transpose) matches too.
    out_t = jax.block_until_ready(
        liquid_layer(x, w_p, alpha2d, transpose_output=False))
    assert out_t.shape == (hidden_size, batch)
    assert jnp.allclose(out_t.T, ref_fn(x), atol=1e-5, rtol=1e-5)

    # --- Case 2: multi-tile grid + ragged last block (B not a multiple of the
    # tile or of 8), exercising the cdiv grid / OOB-clipping path. ---
    b2 = 203
    x2 = jax.random.normal(k_x2, (b2, input_size), dtype=jnp.float32)
    out2 = jax.block_until_ready(liquid_layer(x2, w_p, alpha2d, tb_max=64))
    assert out2.shape == (b2, hidden_size)
    assert jnp.allclose(out2, ref_fn(x2), atol=1e-5, rtol=1e-5)

    # --- Case 3: bf16 matmul operands (v7x MXU cadence), looser tolerance. ---
    out3 = jax.block_until_ready(
        liquid_layer(x2, w_p, alpha2d, tb_max=64, use_bf16_matmul=True))
    assert jnp.allclose(out3, ref_fn(x2), atol=5e-2, rtol=5e-2)

    print("KERNEL_OK")
</pallas_src>

<mosaic_0001>
module attributes {stable_mosaic.version = 11 : i64} {
  func.func @_liquid_kernel(%arg0: i32, %arg1: memref<8x16xf32, #tpu.memory_space<vmem>>, %arg2: memref<32x16xf32, #tpu.memory_space<vmem>>, %arg3: memref<32x1xf32, #tpu.memory_space<vmem>>, %arg4: memref<32x8xf32, #tpu.memory_space<vmem>>) attributes {dimension_semantics = [#tpu.dimension_semantics<parallel>], iteration_bounds = array<i64: 1>, scalar_prefetch = 0 : i64, scratch_operands = 0 : i64, tpu.core_type = #tpu.core_type<tc>, window_params = [{transform_indices = @transform_0, window_bounds = array<i64: 8, 16>}, {pipeline_mode = #tpu.pipeline_mode<synchronous>, transform_indices = @transform_1, window_bounds = array<i64: 32, 16>}, {pipeline_mode = #tpu.pipeline_mode<synchronous>, transform_indices = @transform_2, window_bounds = array<i64: 32, 1>}, {transform_indices = @transform_3, window_bounds = array<i64: 32, 8>}]} {
    %c0 = arith.constant 0 : index
    %c0_0 = arith.constant 0 : index
    %0 = vector.load %arg2[%c0, %c0_0] : memref<32x16xf32, #tpu.memory_space<vmem>>, vector<32x16xf32>
    %c0_1 = arith.constant 0 : index
    %c0_2 = arith.constant 0 : index
    %1 = vector.load %arg1[%c0_1, %c0_2] : memref<8x16xf32, #tpu.memory_space<vmem>>, vector<8x16xf32>
    %cst = arith.constant dense<0.000000e+00> : vector<32x8xf32>
    %2 = tpu.matmul %0, %1, %cst {dimension_numbers = #tpu.dot_dimension_numbers<[1], [1], [0], [0], [0, 0, 1, 0], [], []>} : vector<32x16xf32>, vector<8x16xf32>, vector<32x8xf32> -> vector<32x8xf32>
    %3 = math.tanh %2 : vector<32x8xf32>
    %c0_3 = arith.constant 0 : index
    %c0_4 = arith.constant 0 : index
    %4 = vector.load %arg3[%c0_3, %c0_4] : memref<32x1xf32, #tpu.memory_space<vmem>>, vector<32x1xf32>
    %5 = vector.broadcast %4 : vector<32x1xf32> to vector<32x8xf32>
    %6 = arith.mulf %3, %5 : vector<32x8xf32>
    %c0_5 = arith.constant 0 : index
    %c0_6 = arith.constant 0 : index
    %7 = vector.load %arg4[%c0_5, %c0_6] : memref<32x8xf32, #tpu.memory_space<vmem>>, vector<32x8xf32>
    tpu.vector_store %arg4[%c0_5, %c0_6], %6 {strides = array<i32>} : memref<32x8xf32, #tpu.memory_space<vmem>>, vector<32x8xf32>,
    return
  }
  func.func @transform_0(%arg0: i32) -> (i32, i32) {
    %c0_i32 = arith.constant 0 : i32
    %c0_i32_0 = arith.constant 0 : i32
    return %arg0, %c0_i32 : i32, i32
  }
  func.func @transform_1(%arg0: i32) -> (i32, i32) {
    %c0_i32 = arith.constant 0 : i32
    %c0_i32_0 = arith.constant 0 : i32
    %c0_i32_1 = arith.constant 0 : i32
    return %c0_i32, %c0_i32_0 : i32, i32
  }
  func.func @transform_2(%arg0: i32) -> (i32, i32) {
    %c0_i32 = arith.constant 0 : i32
    %c0_i32_0 = arith.constant 0 : i32
    %c0_i32_1 = arith.constant 0 : i32
    return %c0_i32, %c0_i32_0 : i32, i32
  }
  func.func @transform_3(%arg0: i32) -> (i32, i32) {
    %c0_i32 = arith.constant 0 : i32
    %c0_i32_0 = arith.constant 0 : i32
    return %c0_i32, %arg0 : i32, i32
  }
}

</mosaic_0001>

<bundles_post_ra>
// kernel: liquid_layer.1
= control target key start
LH: loop header
LB: loop body
LE: loop exit
PB: predicated region body
PF: predicated region fallthrough
CT: control target
= control target key end

     0   :  { %vm19_vm0 = vcmask 130048   ;;  %v192_v3 = vmov 0   ;;  %vm152_vm1 = vcmask 64512   ;;  %s260_s0 = inlined_call_operand.vmem [shape: f32[8,16], index: 0, kind: input, shape index: {}]   ;;  %s261_s1 = inlined_call_operand.vmem [shape: f32[32,16], index: 1, kind: input, shape index: {}]   ;;  %s262_s2 = inlined_call_operand.vmem [shape: f32[32,1], index: 2, kind: input, shape index: {}]   ;;  %s263_s3 = inlined_call_operand.vmem [shape: f32[32,8], index: 3, kind: output, shape index: {}]  }
   0x1   :  { %v18_v0 = vld [vmem:[%s260_s0] sm:$0xff]  ;;  %v16_v2 = vld [vmem:[%s261_s1 + $0x10] sm:$0xff]  ;;  %183 = vset.pattern.permute.xlu1 %v192_v3  ;;  %182 = vset.pattern.permute.xlu0 %v192_v3  ;;  %v15_v5 = vld [vmem:[%s261_s1 + $0x8] sm:$0xff] }
   0x2   :  { %v14_v1 = vld [vmem:[%s261_s1] sm:$0xff]  ;;  %171 = vmatprep.subr.msk.mxu0 %vm19_vm0, %v18_v0  ;;  %179 = vmatprep.subr.msk.mxu1 %vm19_vm0, %v18_v0  ;;  %v126_v4 = vld [vmem:[%s262_s2 + $0x10] sm:$0xff]  ;;  %v17_v6 = vld [vmem:[%s261_s1 + $0x18] sm:$0xff] }
   0x3   :  { %172 = vmatpush3.xpose.msk.msra.mxu0 %vm19_vm0, %v18_v0  ;;  %180 = vmatpush3.xpose.msk.msra.mxu1 %vm19_vm0, %v18_v0  ;;  %v124_v7 = vld [vmem:[%s262_s2] sm:$0xff]  ;;  %v127_v8 = vld [vmem:[%s262_s2 + $0x18] sm:$0xff]  ;;  %v125_v9 = vld [vmem:[%s262_s2 + $0x8] sm:$0xff] }
   0x4   :  { %173 = vmatprep.mubr.msk.f32.mxu0 %vm19_vm0, %v14_v1  ;;  %176 = vmatprep.mubr.msk.f32.mxu1 %vm19_vm0, %v16_v2 }
   0x5   :  { %140 = vperm.xlu1 %183, %v126_v4   ;;  %130 = vperm.xlu0 %182, %v124_v7  }
   0x6   :  { %174 = vmatmul.mubr.msk.f32.vlgmr.msra.gmra.mxu0 %vm19_vm0, %v15_v5  ;;  %177 = vmatmul.mubr.msk.f32.vlgmr.msra.gmra.mxu1 %vm19_vm0, %v17_v6 }
   0x9   :  { %145 = vperm.xlu1 %183, %v127_v8   ;;  %135 = vperm.xlu0 %182, %v125_v9  }
  0x80   :  { %v131_v14 = vpop.permute.xlu0 %130  ;;  %v141_v15 = vpop.permute.xlu1 %140 }
  0x84   :  { %v136_v17 = vpop.permute.xlu0 %135  ;;  %v146_v19 = vpop.permute.xlu1 %145 }
  0xc6   :  { %v175_v10 = vpop.f32.mrf.mxu0  ;;  %v178_v11 = vpop.f32.mrf.mxu1 }
  0xc7   :  { %184 = vtanh.f32 %v175_v10 }
  0xc8   :  { %186 = vtanh.f32 %v178_v11  ;;  %v101_v12 = vpop.f32.mrf.mxu0  ;;  %v111_v13 = vpop.f32.mrf.mxu1 }
  0xc9   :  { %188 = vtanh.f32 %v101_v12 }
  0xca   :  { %190 = vtanh.f32 %v111_v13 }
  0xd4   :  { %v185_v16 = vpop.eup %184 }
  0xd5   :  { %v187_v18 = vpop.eup %186  ;;  %v149_v20 = vmul.f32 %v185_v16, %v136_v17 }
  0xd6   :  { %v189_v21 = vpop.eup %188  ;;  %v151_v22 = vmul.f32 %v187_v18, %v146_v19 }
  0xd7   :  { %v191_v23 = vpop.eup %190  ;;  %v148_v24 = vmul.f32 %v189_v21, %v131_v14  ;;  %154 = vst.msk [vmem:[%s263_s3 + $0x8] sm:$0xff] %vm152_vm1, %v149_v20 }
  0xd8   :  { %v150_v25 = vmul.f32 %v191_v23, %v141_v15  ;;  %156 = vst.msk [vmem:[%s263_s3 + $0x18] sm:$0xff] %vm152_vm1, %v151_v22 }
  0xd9   :  { %153 = vst.msk [vmem:[%s263_s3] sm:$0xff] %vm152_vm1, %v148_v24 }
  0xda   :  { %155 = vst.msk [vmem:[%s263_s3 + $0x10] sm:$0xff] %vm152_vm1, %v150_v25 }

</bundles_post_ra>
